<compile_context>
chip_gen: v6e
topology: v6e:2x2x1
jax: 0.10.0
libtpu: 0.0.40
codegen_flags: <defaults>
</compile_context>

<pallas_src>
import jax
import jax.numpy as jnp
from jax.experimental import pallas as pl
from jax.experimental.pallas import tpu as pltpu

LANE = 128


# ---------------------------------------------------------------------------
# Fused forward kernel: conv1+ReLU -> conv2+ReLU -> GAP -> linear (one grid step
# per batch element, everything resident in VMEM, no HBM round-trips).
# ---------------------------------------------------------------------------
def _fused_forward_kernel(x_ref, b1w_ref, b1b_ref, b2w_ref, b2b_ref,
                          g_ref, wf_ref, bf_ref,
                          f1_ref, f2_ref, logits_ref):
    """Per-batch-element block shapes:

    x_ref      (H, W*Cin)        f32  lane-dense input rows (row = h, col = (w, ci))
    b1w_ref    (3*W*Cin, W*C1)   bf16 K-stacked banded conv1 weights (kh taps stacked)
    b1b_ref    (1, W*C1)         f32  conv1 bias tiled over w
    b2w_ref    (3*W*C1, W*C2)    bf16 K-stacked banded conv2 weights
    b2b_ref    (1, W*C2)         f32  conv2 bias tiled over w
    g_ref      (8, H)            bf16 all-ones pooling matrix (8 identical rows)
    wf_ref     (W*C2, 128)       bf16 head weights * 1/(H*W), tiled over w, 128-lane pad
    bf_ref     (1, 128)          f32  head bias, zero-padded to 128 lanes
    f1_ref     (H, W*C1)         bf16 block1 features (lane-dense)
    f2_ref     (H, W*C2)         bf16 block2 features (lane-dense)
    logits_ref (8, 128)          f32  logits slab, 8 identical rows, first K lanes valid
    """
    H = x_ref.shape[0]
    row = jax.lax.broadcasted_iota(jnp.int32, (H, 1), 0)
    not_first = row > 0          # zero the h == 0 row of the "h-1" tap (SAME padding)
    not_last = row < H - 1       # zero the h == H-1 row of the "h+1" tap

    def conv3x3_relu(act, w_ref, b_ref):
        # act: (H, W*Ci) f32.  kh shifts via XLU sublane roll + boundary mask (VPU);
        # kw shifts live in the banded weight slab; the three kh taps are stacked
        # along K so the whole 3x3 conv is ONE bf16 MXU matmul with f32 accumulation.
        up = jnp.where(not_first, pltpu.roll(act, shift=1, axis=0), 0.0)      # act[h-1]
        dn = jnp.where(not_last, pltpu.roll(act, shift=H - 1, axis=0), 0.0)   # act[h+1]
        cat = jnp.concatenate([up, act, dn], axis=-1).astype(jnp.bfloat16)    # (H, 3*W*Ci)
        acc = jnp.dot(cat, w_ref[...], preferred_element_type=jnp.float32)    # (H, W*Co)
        return jnp.maximum(acc + b_ref[...], 0.0)                             # f32 VPU

    x = x_ref[...]
    h1 = conv3x3_relu(x, b1w_ref, b1b_ref)             # (H, W*C1) f32
    f1_ref[...] = h1.astype(jnp.bfloat16)

    h2 = conv3x3_relu(h1, b2w_ref, b2b_ref)             # (H, W*C2) f32
    h2b = h2.astype(jnp.bfloat16)
    f2_ref[...] = h2b

    # GAP + head: row-sum over h via an all-ones (8,H) matrix (full 8-sublane M tile),
    # w-sum + 1/(H*W) scale are folded into the tiled head weights.
    pooled = jnp.dot(g_ref[...], h2b, preferred_element_type=jnp.float32)     # (8, W*C2)
    logits = jnp.dot(pooled.astype(jnp.bfloat16), wf_ref[...],
                     preferred_element_type=jnp.float32) + bf_ref[...]        # (8, 128)
    logits_ref[...] = logits.astype(logits_ref.dtype)


# ---------------------------------------------------------------------------
# Wrapper: operand preparation (layout plumbing, done once) + pallas_call
# ---------------------------------------------------------------------------
def _prepare_operands(params, N, H, W, Cin):
    f32, bf16 = jnp.float32, jnp.bfloat16
    w1, b1 = params["w1"], params["b1"]
    w2, b2 = params["w2"], params["b2"]
    wf, bf = params["wf"], params["bf"]
    C1, C2, K = w1.shape[-1], w2.shape[-1], wf.shape[-1]

    wcol = jnp.arange(W)

    # K-stacked banded conv weights:
    #   rows [0:W*ci]       -> kh=0 tap (pairs with the "h-1" activations)
    #   rows [W*ci:2*W*ci]  -> kh=1 tap (center)
    #   rows [2*W*ci:]      -> kh=2 tap (pairs with the "h+1" activations)
    # B_kh[(w_in, ci), (w, co)] = W[kh, kw = w_in - w + 1, ci, co] (zero otherwise),
    # which bakes SAME zero-padding along w into the band structure.
    def banded_stacked(w_hwio):
        ci, co = w_hwio.shape[2], w_hwio.shape[3]
        taps = []
        for kh in range(3):
            B = jnp.zeros((W * ci, W * co), f32)
            for kw in range(3):
                sel = (wcol[:, None] - wcol[None, :] == (kw - 1)).astype(f32)   # (W, W)
                B = B + jnp.einsum("ab,ij->aibj", sel,
                                   w_hwio[kh, kw].astype(f32)).reshape(W * ci, W * co)
            taps.append(B)
        return jnp.concatenate(taps, axis=0).astype(bf16)        # (3*W*ci, W*co), bf16

    b1w = banded_stacked(w1)
    b2w = banded_stacked(w2)
    b1b = jnp.tile(b1.astype(f32), W).reshape(1, W * C1)          # f32 (VPU add)
    b2b = jnp.tile(b2.astype(f32), W).reshape(1, W * C2)

    # GAP pool matrix: 8 identical all-ones rows (exact in bf16); the 1/(H*W) scale is
    # folded into the head weights in f32 below so arbitrary H*W stay exact.
    g = jnp.ones((8, H), bf16)

    wf_scaled = wf.astype(f32) / float(H * W)
    wf_t = jnp.tile(wf_scaled, (W, 1))                            # (W*C2, K)
    wf_pad = jnp.zeros((W * C2, LANE), f32).at[:, :K].set(wf_t).astype(bf16)
    bf_pad = jnp.zeros((1, LANE), f32).at[:, :K].set(bf.astype(f32).reshape(1, K))

    return dict(b1w=b1w, b1b=b1b, b2w=b2w, b2b=b2b, g=g, wf=wf_pad, bf=bf_pad,
                C1=C1, C2=C2, K=K)


def fused_forward(x_nchw, ops):
    N, Cin, H, W = x_nchw.shape
    C1, C2, K = ops["C1"], ops["C2"], ops["K"]
    NH = N * H

    # NCHW -> NHWC -> lane-dense (N*H, W*Cin): pure layout plumbing at the boundary.
    x2 = jnp.transpose(x_nchw, (0, 2, 3, 1)).reshape(NH, W * Cin)

    def const_spec(arr):
        nd = arr.ndim
        return pl.BlockSpec(arr.shape, lambda n, _nd=nd: (0,) * _nd)   # same block each step

    operands = (x2, ops["b1w"], ops["b1b"], ops["b2w"], ops["b2b"],
                ops["g"], ops["wf"], ops["bf"])

    in_specs = [
        pl.BlockSpec((H, W * Cin), lambda n: (n, 0)),   # per-batch activation block
        const_spec(ops["b1w"]), const_spec(ops["b1b"]),
        const_spec(ops["b2w"]), const_spec(ops["b2b"]),
        const_spec(ops["g"]), const_spec(ops["wf"]), const_spec(ops["bf"]),
    ]
    out_shapes = (
        jax.ShapeDtypeStruct((NH, W * C1), jnp.bfloat16),   # block1 features, lane-dense
        jax.ShapeDtypeStruct((NH, W * C2), jnp.bfloat16),   # block2 features, lane-dense
        jax.ShapeDtypeStruct((N, 8, LANE), jnp.float32),    # logits slab per batch element
    )
    out_specs = (
        pl.BlockSpec((H, W * C1), lambda n: (n, 0)),
        pl.BlockSpec((H, W * C2), lambda n: (n, 0)),
        pl.BlockSpec((None, 8, LANE), lambda n: (n, 0, 0)),  # squeezed batch dim
    )

    f1_2d, f2_2d, logits_slab = pl.pallas_call(
        _fused_forward_kernel,
        out_shape=out_shapes,
        grid=(N,),
        in_specs=in_specs,
        out_specs=out_specs,
        compiler_params=pltpu.CompilerParams(dimension_semantics=("parallel",)),
    )(*operands)

    # Hooks in PyTorch capture NCHW float32 tensors -> convert at the boundary.
    f1 = f1_2d.astype(jnp.float32).reshape(N, H, W, C1).transpose(0, 3, 1, 2)
    f2 = f2_2d.astype(jnp.float32).reshape(N, H, W, C2).transpose(0, 3, 1, 2)
    logits = logits_slab[:, 0, :K]
    return logits, f1, f2


# ---------------------------------------------------------------------------
# FeatureExtractor equivalent
# ---------------------------------------------------------------------------
class FeatureExtractorPallas:
    """JAX/Pallas equivalent of the PyTorch FeatureExtractor module.

    Wraps the small CNN backbone and returns the classifier logits plus the
    intermediate outputs of the hooked blocks ('block1', 'block2'), matching
    the structure the PyTorch forward-hook version produces.
    """

    def __init__(self, params, block_names=("block1", "block2")):
        self.params = params
        self.block_names = block_names
        self._op_cache = {}

    def __call__(self, x_nchw):
        N, Cin, H, W = x_nchw.shape
        key = (N, Cin, H, W)
        if key not in self._op_cache:
            self._op_cache[key] = _prepare_operands(self.params, N, H, W, Cin)
        logits, f1, f2 = fused_forward(x_nchw, self._op_cache[key])
        block_outputs = {"block1": f1, "block2": f2}
        features = {name: block_outputs[name] for name in self.block_names}
        return {"logits": logits, "features": features}


# ---------------------------------------------------------------------------
# Deterministic parameter init + pure-JAX reference for a correctness check
# ---------------------------------------------------------------------------
def init_params(key, cin=4, c1=8, c2=8, num_classes=10):
    k1, k2, k3 = jax.random.split(key, 3)
    scale1 = 1.0 / (3 * 3 * cin) ** 0.5
    scale2 = 1.0 / (3 * 3 * c1) ** 0.5
    scale3 = 1.0 / c2 ** 0.5
    return {
        "w1": scale1 * jax.random.normal(k1, (3, 3, cin, c1), jnp.float32),
        "b1": jnp.linspace(-0.1, 0.1, c1, dtype=jnp.float32),
        "w2": scale2 * jax.random.normal(k2, (3, 3, c1, c2), jnp.float32),
        "b2": jnp.linspace(-0.1, 0.1, c2, dtype=jnp.float32),
        "wf": scale3 * jax.random.normal(k3, (c2, num_classes), jnp.float32),
        "bf": jnp.linspace(-0.05, 0.05, num_classes, dtype=jnp.float32),
    }


def reference_forward(x_nchw, p):
    """Pure-JAX high-precision reference mirroring the PyTorch forward."""
    x = jnp.transpose(x_nchw, (0, 2, 3, 1))
    dn = ("NHWC", "HWIO", "NHWC")
    hi = jax.lax.Precision.HIGHEST
    f1 = jax.nn.relu(
        jax.lax.conv_general_dilated(x, p["w1"], (1, 1), "SAME",
                                     dimension_numbers=dn, precision=hi) + p["b1"])
    f2 = jax.nn.relu(
        jax.lax.conv_general_dilated(f1, p["w2"], (1, 1), "SAME",
                                     dimension_numbers=dn, precision=hi) + p["b2"])
    pooled = jnp.mean(f2, axis=(1, 2))
    logits = jnp.dot(pooled, p["wf"], precision=hi) + p["bf"]
    return logits, jnp.transpose(f1, (0, 3, 1, 2)), jnp.transpose(f2, (0, 3, 1, 2))


if __name__ == "__main__":
    key = jax.random.PRNGKey(0)
    kx, kp = jax.random.split(key)

    # PyTorch-style NCHW input: batch=2, channels=4, spatial=16x16.
    x = jax.random.normal(kx, (2, 4, 16, 16), jnp.float32)
    params = init_params(kp)

    extractor = FeatureExtractorPallas(params)
    out = extractor(x)
    jax.block_until_ready(out)

    # Correctness check: kernel uses bf16 MXU operands (f32 accumulation) and bf16
    # feature writeback, so compare against a highest-precision reference with a
    # matching tolerance.
    ref_logits, ref_f1, ref_f2 = reference_forward(x, params)
    assert jnp.allclose(out["logits"], ref_logits, atol=5e-2), "logits mismatch"
    assert jnp.allclose(out["features"]["block1"], ref_f1, atol=5e-2), "block1 mismatch"
    assert jnp.allclose(out["features"]["block2"], ref_f2, atol=5e-2), "block2 mismatch"
    assert out["logits"].shape == (2, 10)
    assert out["features"]["block1"].shape == (2, 8, 16, 16)
    assert out["features"]["block2"].shape == (2, 8, 16, 16)

    print("KERNEL_OK")
</pallas_src>

<mosaic_0001>
module attributes {stable_mosaic.version = 11 : i64} {
  func.func @_fused_forward_kernel(%arg0: i32, %arg1: memref<16x64xf32, #tpu.memory_space<vmem>>, %arg2: memref<192x128xbf16, #tpu.memory_space<vmem>>, %arg3: memref<1x128xf32, #tpu.memory_space<vmem>>, %arg4: memref<384x128xbf16, #tpu.memory_space<vmem>>, %arg5: memref<1x128xf32, #tpu.memory_space<vmem>>, %arg6: memref<8x16xbf16, #tpu.memory_space<vmem>>, %arg7: memref<128x128xbf16, #tpu.memory_space<vmem>>, %arg8: memref<1x128xf32, #tpu.memory_space<vmem>>, %arg9: memref<16x128xbf16, #tpu.memory_space<vmem>>, %arg10: memref<16x128xbf16, #tpu.memory_space<vmem>>, %arg11: memref<1x8x128xf32, #tpu.memory_space<vmem>>) attributes {dimension_semantics = [#tpu.dimension_semantics<parallel>], iteration_bounds = array<i64: 2>, scalar_prefetch = 0 : i64, scratch_operands = 0 : i64, tpu.core_type = #tpu.core_type<tc>, window_params = [{transform_indices = @transform_0, window_bounds = array<i64: 16, 64>}, {pipeline_mode = #tpu.pipeline_mode<synchronous>, transform_indices = @transform_1, window_bounds = array<i64: 192, 128>}, {pipeline_mode = #tpu.pipeline_mode<synchronous>, transform_indices = @transform_2, window_bounds = array<i64: 1, 128>}, {pipeline_mode = #tpu.pipeline_mode<synchronous>, transform_indices = @transform_3, window_bounds = array<i64: 384, 128>}, {pipeline_mode = #tpu.pipeline_mode<synchronous>, transform_indices = @transform_4, window_bounds = array<i64: 1, 128>}, {pipeline_mode = #tpu.pipeline_mode<synchronous>, transform_indices = @transform_5, window_bounds = array<i64: 8, 16>}, {pipeline_mode = #tpu.pipeline_mode<synchronous>, transform_indices = @transform_6, window_bounds = array<i64: 128, 128>}, {pipeline_mode = #tpu.pipeline_mode<synchronous>, transform_indices = @transform_7, window_bounds = array<i64: 1, 128>}, {transform_indices = @transform_8, window_bounds = array<i64: 16, 128>}, {transform_indices = @transform_9, window_bounds = array<i64: 16, 128>}, {transform_indices = @transform_10, window_bounds = array<i64: 1, 8, 128>}]} {
    %0 = tpu.iota {dimensions = array<i32: 0>} : vector<16x1xi32>
    %c0_i32 = arith.constant 0 : i32
    %1 = vector.broadcast %c0_i32 : i32 to vector<16x1xi32>
    %2 = arith.cmpi sgt, %0, %1 : vector<16x1xi32>
    %c15_i32 = arith.constant 15 : i32
    %3 = vector.broadcast %c15_i32 : i32 to vector<16x1xi32>
    %4 = arith.cmpi slt, %0, %3 : vector<16x1xi32>
    %c0 = arith.constant 0 : index
    %c0_0 = arith.constant 0 : index
    %5 = vector.load %arg1[%c0, %c0_0] : memref<16x64xf32, #tpu.memory_space<vmem>>, vector<16x64xf32>
    %c1_i32 = arith.constant 1 : i32
    %6 = tpu.dynamic_rotate %5 by %c1_i32 dim 0 : vector<16x64xf32>, i32 -> vector<16x64xf32>
    %cst = arith.constant 0.000000e+00 : f32
    %7 = vector.shape_cast %2 : vector<16x1xi1> to vector<16x1xi1>
    %8 = vector.broadcast %7 : vector<16x1xi1> to vector<16x64xi1>
    %9 = vector.broadcast %cst : f32 to vector<16x64xf32>
    %10 = arith.select %8, %6, %9 : vector<16x64xi1>, vector<16x64xf32>
    %c15_i32_1 = arith.constant 15 : i32
    %11 = tpu.dynamic_rotate %5 by %c15_i32_1 dim 0 : vector<16x64xf32>, i32 -> vector<16x64xf32>
    %cst_2 = arith.constant 0.000000e+00 : f32
    %12 = vector.shape_cast %4 : vector<16x1xi1> to vector<16x1xi1>
    %13 = vector.broadcast %12 : vector<16x1xi1> to vector<16x64xi1>
    %14 = vector.broadcast %cst_2 : f32 to vector<16x64xf32>
    %15 = arith.select %13, %11, %14 : vector<16x64xi1>, vector<16x64xf32>
    %16 = tpu.concatenate %10, %5, %15 in 1 : vector<16x64xf32>, vector<16x64xf32>, vector<16x64xf32> -> vector<16x192xf32>
    %17 = arith.truncf %16 : vector<16x192xf32> to vector<16x192xbf16>
    %c0_3 = arith.constant 0 : index
    %c0_4 = arith.constant 0 : index
    %18 = vector.load %arg2[%c0_3, %c0_4] : memref<192x128xbf16, #tpu.memory_space<vmem>>, vector<192x128xbf16>
    %cst_5 = arith.constant dense<0.000000e+00> : vector<16x128xf32>
    %19 = tpu.matmul %17, %18, %cst_5 {dimension_numbers = #tpu.dot_dimension_numbers<[1], [0], [0], [1], [0, 0, 1, 1], [], []>} : vector<16x192xbf16>, vector<192x128xbf16>, vector<16x128xf32> -> vector<16x128xf32>
    %c0_6 = arith.constant 0 : index
    %c0_7 = arith.constant 0 : index
    %20 = vector.load %arg3[%c0_6, %c0_7] : memref<1x128xf32, #tpu.memory_space<vmem>>, vector<1x128xf32>
    %21 = vector.broadcast %20 : vector<1x128xf32> to vector<16x128xf32>
    %22 = arith.addf %19, %21 : vector<16x128xf32>
    %cst_8 = arith.constant 0.000000e+00 : f32
    %23 = vector.broadcast %cst_8 : f32 to vector<16x128xf32>
    %24 = arith.maximumf %22, %23 : vector<16x128xf32>
    %25 = arith.truncf %24 : vector<16x128xf32> to vector<16x128xbf16>
    %c0_9 = arith.constant 0 : index
    %c0_10 = arith.constant 0 : index
    %26 = vector.load %arg9[%c0_9, %c0_10] : memref<16x128xbf16, #tpu.memory_space<vmem>>, vector<16x128xbf16>
    tpu.vector_store %arg9[%c0_9, %c0_10], %25 {strides = array<i32>} : memref<16x128xbf16, #tpu.memory_space<vmem>>, vector<16x128xbf16>,
    %c1_i32_11 = arith.constant 1 : i32
    %27 = tpu.dynamic_rotate %24 by %c1_i32_11 dim 0 : vector<16x128xf32>, i32 -> vector<16x128xf32>
    %cst_12 = arith.constant 0.000000e+00 : f32
    %28 = vector.shape_cast %2 : vector<16x1xi1> to vector<16x1xi1>
    %29 = vector.broadcast %28 : vector<16x1xi1> to vector<16x128xi1>
    %30 = vector.broadcast %cst_12 : f32 to vector<16x128xf32>
    %31 = arith.select %29, %27, %30 : vector<16x128xi1>, vector<16x128xf32>
    %c15_i32_13 = arith.constant 15 : i32
    %32 = tpu.dynamic_rotate %24 by %c15_i32_13 dim 0 : vector<16x128xf32>, i32 -> vector<16x128xf32>
    %cst_14 = arith.constant 0.000000e+00 : f32
    %33 = vector.shape_cast %4 : vector<16x1xi1> to vector<16x1xi1>
    %34 = vector.broadcast %33 : vector<16x1xi1> to vector<16x128xi1>
    %35 = vector.broadcast %cst_14 : f32 to vector<16x128xf32>
    %36 = arith.select %34, %32, %35 : vector<16x128xi1>, vector<16x128xf32>
    %37 = tpu.concatenate %31, %24, %36 in 1 : vector<16x128xf32>, vector<16x128xf32>, vector<16x128xf32> -> vector<16x384xf32>
    %38 = arith.truncf %37 : vector<16x384xf32> to vector<16x384xbf16>
    %c0_15 = arith.constant 0 : index
    %c0_16 = arith.constant 0 : index
    %39 = vector.load %arg4[%c0_15, %c0_16] : memref<384x128xbf16, #tpu.memory_space<vmem>>, vector<384x128xbf16>
    %cst_17 = arith.constant dense<0.000000e+00> : vector<16x128xf32>
    %40 = tpu.matmul %38, %39, %cst_17 {dimension_numbers = #tpu.dot_dimension_numbers<[1], [0], [0], [1], [0, 0, 1, 1], [], []>} : vector<16x384xbf16>, vector<384x128xbf16>, vector<16x128xf32> -> vector<16x128xf32>
    %c0_18 = arith.constant 0 : index
    %c0_19 = arith.constant 0 : index
    %41 = vector.load %arg5[%c0_18, %c0_19] : memref<1x128xf32, #tpu.memory_space<vmem>>, vector<1x128xf32>
    %42 = vector.broadcast %41 : vector<1x128xf32> to vector<16x128xf32>
    %43 = arith.addf %40, %42 : vector<16x128xf32>
    %cst_20 = arith.constant 0.000000e+00 : f32
    %44 = vector.broadcast %cst_20 : f32 to vector<16x128xf32>
    %45 = arith.maximumf %43, %44 : vector<16x128xf32>
    %46 = arith.truncf %45 : vector<16x128xf32> to vector<16x128xbf16>
    %c0_21 = arith.constant 0 : index
    %c0_22 = arith.constant 0 : index
    %47 = vector.load %arg10[%c0_21, %c0_22] : memref<16x128xbf16, #tpu.memory_space<vmem>>, vector<16x128xbf16>
    tpu.vector_store %arg10[%c0_21, %c0_22], %46 {strides = array<i32>} : memref<16x128xbf16, #tpu.memory_space<vmem>>, vector<16x128xbf16>,
    %c0_23 = arith.constant 0 : index
    %c0_24 = arith.constant 0 : index
    %48 = vector.load %arg6[%c0_23, %c0_24] : memref<8x16xbf16, #tpu.memory_space<vmem>>, vector<8x16xbf16>
    %cst_25 = arith.constant dense<0.000000e+00> : vector<8x128xf32>
    %49 = tpu.matmul %48, %46, %cst_25 {dimension_numbers = #tpu.dot_dimension_numbers<[1], [0], [0], [1], [0, 0, 1, 1], [], []>} : vector<8x16xbf16>, vector<16x128xbf16>, vector<8x128xf32> -> vector<8x128xf32>
    %50 = arith.truncf %49 : vector<8x128xf32> to vector<8x128xbf16>
    %c0_26 = arith.constant 0 : index
    %c0_27 = arith.constant 0 : index
    %51 = vector.load %arg7[%c0_26, %c0_27] : memref<128x128xbf16, #tpu.memory_space<vmem>>, vector<128x128xbf16>
    %cst_28 = arith.constant dense<0.000000e+00> : vector<8x128xf32>
    %52 = tpu.matmul %50, %51, %cst_28 {dimension_numbers = #tpu.dot_dimension_numbers<[1], [0], [0], [1], [0, 0, 1, 1], [], []>} : vector<8x128xbf16>, vector<128x128xbf16>, vector<8x128xf32> -> vector<8x128xf32>
    %c0_29 = arith.constant 0 : index
    %c0_30 = arith.constant 0 : index
    %53 = vector.load %arg8[%c0_29, %c0_30] : memref<1x128xf32, #tpu.memory_space<vmem>>, vector<1x128xf32>
    %54 = vector.broadcast %53 : vector<1x128xf32> to vector<8x128xf32>
    %55 = arith.addf %52, %54 : vector<8x128xf32>
    %c0_31 = arith.constant 0 : index
    %c0_32 = arith.constant 0 : index
    %c0_33 = arith.constant 0 : index
    %56 = vector.load %arg11[%c0_31, %c0_32, %c0_33] : memref<1x8x128xf32, #tpu.memory_space<vmem>>, vector<1x8x128xf32>
    %57 = vector.shape_cast %56 : vector<1x8x128xf32> to vector<8x128xf32>
    %58 = vector.shape_cast %55 : vector<8x128xf32> to vector<1x8x128xf32>
    tpu.vector_store %arg11[%c0_31, %c0_32, %c0_33], %58 {strides = array<i32>} : memref<1x8x128xf32, #tpu.memory_space<vmem>>, vector<1x8x128xf32>,
    return
  }
  func.func @transform_0(%arg0: i32) -> (i32, i32) {
    %c0_i32 = arith.constant 0 : i32
    %c0_i32_0 = arith.constant 0 : i32
    return %arg0, %c0_i32 : i32, i32
  }
  func.func @transform_1(%arg0: i32) -> (i32, i32) {
    %c0_i32 = arith.constant 0 : i32
    %c0_i32_0 = arith.constant 0 : i32
    %c0_i32_1 = arith.constant 0 : i32
    return %c0_i32, %c0_i32_0 : i32, i32
  }
  func.func @transform_2(%arg0: i32) -> (i32, i32) {
    %c0_i32 = arith.constant 0 : i32
    %c0_i32_0 = arith.constant 0 : i32
    %c0_i32_1 = arith.constant 0 : i32
    return %c0_i32, %c0_i32_0 : i32, i32
  }
  func.func @transform_3(%arg0: i32) -> (i32, i32) {
    %c0_i32 = arith.constant 0 : i32
    %c0_i32_0 = arith.constant 0 : i32
    %c0_i32_1 = arith.constant 0 : i32
    return %c0_i32, %c0_i32_0 : i32, i32
  }
  func.func @transform_4(%arg0: i32) -> (i32, i32) {
    %c0_i32 = arith.constant 0 : i32
    %c0_i32_0 = arith.constant 0 : i32
    %c0_i32_1 = arith.constant 0 : i32
    return %c0_i32, %c0_i32_0 : i32, i32
  }
  func.func @transform_5(%arg0: i32) -> (i32, i32) {
    %c0_i32 = arith.constant 0 : i32
    %c0_i32_0 = arith.constant 0 : i32
    %c0_i32_1 = arith.constant 0 : i32
    return %c0_i32, %c0_i32_0 : i32, i32
  }
  func.func @transform_6(%arg0: i32) -> (i32, i32) {
    %c0_i32 = arith.constant 0 : i32
    %c0_i32_0 = arith.constant 0 : i32
    %c0_i32_1 = arith.constant 0 : i32
    return %c0_i32, %c0_i32_0 : i32, i32
  }
  func.func @transform_7(%arg0: i32) -> (i32, i32) {
    %c0_i32 = arith.constant 0 : i32
    %c0_i32_0 = arith.constant 0 : i32
    %c0_i32_1 = arith.constant 0 : i32
    return %c0_i32, %c0_i32_0 : i32, i32
  }
  func.func @transform_8(%arg0: i32) -> (i32, i32) {
    %c0_i32 = arith.constant 0 : i32
    %c0_i32_0 = arith.constant 0 : i32
    return %arg0, %c0_i32 : i32, i32
  }
  func.func @transform_9(%arg0: i32) -> (i32, i32) {
    %c0_i32 = arith.constant 0 : i32
    %c0_i32_0 = arith.constant 0 : i32
    return %arg0, %c0_i32 : i32, i32
  }
  func.func @transform_10(%arg0: i32) -> (i32, i32, i32) {
    %c0_i32 = arith.constant 0 : i32
    %c0_i32_0 = arith.constant 0 : i32
    %c0_i32_1 = arith.constant 0 : i32
    return %arg0, %c0_i32, %c0_i32_0 : i32, i32, i32
  }
}

</mosaic_0001>

<bundles_post_ra>
// kernel: tpu_custom_call.1
= control target key start
LH: loop header
LB: loop body
LE: loop exit
PB: predicated region body
PF: predicated region fallthrough
CT: control target
= control target key end

     0   :  { %s2338_s0 = inlined_call_operand.hbm [shape: f32[32,64], index: 0, kind: input, shape index: {}]   ;;  %s2339_s1 = inlined_call_operand.hbm [shape: bf16[192,128], index: 1, kind: input, shape index: {}]   ;;  %s2340_s2 = inlined_call_operand.vmem [shape: f32[1,128], index: 2, kind: input, shape index: {}]   ;;  %s2341_s3 = inlined_call_operand.hbm [shape: bf16[384,128], index: 3, kind: input, shape index: {}]   ;;  %s2342_s4 = inlined_call_operand.vmem [shape: f32[1,128], index: 4, kind: input, shape index: {}]   ;;  %s2343_s5 = inlined_call_operand.vmem [shape: bf16[8,16], index: 5, kind: input, shape index: {}]   ;;  %s2344_s6 = inlined_call_operand.hbm [shape: bf16[128,128], index: 6, kind: input, shape index: {}]   ;;  %s2345_s7 = inlined_call_operand.vmem [shape: f32[1,128], index: 7, kind: input, shape index: {}]   ;;  %s2346_s8 = inlined_call_operand.hbm [shape: bf16[32,128], index: 8, kind: output, shape index: {0}]   ;;  %s2347_s9 = inlined_call_operand.hbm [shape: bf16[32,128], index: 9, kind: output, shape index: {1}]   ;;  %s2348_s10 = inlined_call_operand.hbm [shape: f32[2,8,128], index: 10, kind: output, shape index: {2}]  }
   0x1   :  { %2356 = sst [smem:[#allocation20_spill]] %s2338_s0 }
   0x2   :  { %2357 = sst [smem:[#allocation21_spill]] %s2339_s1 }
   0x3   :  { %2358 = sst [smem:[#allocation22_spill]] %s2341_s3 }
   0x4   :  { %2359 = sst [smem:[#allocation23_spill]] %s2344_s6 }
   0x5   :  { %16 = vsyncpa [#allocation3], 0 }
   0x6   :  { %18 = vsyncpa [#allocation3 + $0x1], 0 }
   0x7   :  { %19 = vsyncpa [#allocation6], 0 }
   0x8   :  { %20 = vsyncpa [#allocation9], 0 }
   0x9   :  { %21 = vsyncpa [#allocation4], 0 }
   0xa   :  { %23 = vsyncpa [#allocation4 + $0x1], 0 }
   0xb   :  { %24 = vsyncpa [#allocation12], 0 }
   0xc   :  { %26 = vsyncpa [#allocation12 + $0x1], 0  ;;  %s1973_s13 = smov 0   ;;  %s1975_s14 = smov 0  }
   0xd   :  { %s1977_s15 = smov 0   ;;  %s1979_s16 = smov 0  }
   0xe LB: > { %s1994_s17 = sadd.s32 4294967295, %s1899_s16   ;;  %s2351_s18 = sadd.s32 4294967294, %s1899_s16   ;;  %s1899_s16 = sphi %s1979_s16, %s2387_s16   ;;  %s1895_s15 = sphi %s1977_s15, %s2386_s15   ;;  %s1891_s14 = sphi %s1975_s14, %s2385_s14   ;;  %s1887_s13 = sphi %s1973_s13, %s2384_s13  }
   0xf   : > { %p52_p0 = scmp.ne.s32.totalorder %s1891_s14, %s1887_s13  ;;  %p2349_p1 = scmp.eq.s32.totalorder %s1994_s17, 0 }
  0x10   : > { %p229_p3 = scmp.eq.s32.totalorder %s2351_s18, 1  ;;  %p1329_p5 = scmp.ge.s32.totalorder %s1899_s16, 1 }
  0x11   : > { %p2005_p4 = por %p2349_p1, %p52_p0  ;;  %p288_p7 = scmp.lt.s32.totalorder %s1899_s16, 3 }
  0x12   : > { %p2010_p6 = por %p229_p3, %p52_p0  ;;  %s1901_s22 = smov [#allocation5]  }
  0x13   : > { %s2360_s19 = scalar_select %p2005_p4, 1, 0 }
  0x14   : > { %s2361_s20 = scalar_select %p2010_p6, 1, 0 }
  0x15   : > { %p2015_p8 = pnand %p1329_p5, %p288_p7  ;;  %s300_s23 = sshll.u32 %s1901_s22, 4  ;;  %s301_s23 = int_to_ptr.vmem [resolvable:$true] %s300_s23 }
  0x16   : > { %s1902_s25 = smov [#allocation7]   ;;  %s1903_s27 = smov [#allocation8]  }
  0x17   : > { %s2362_s21 = scalar_select %p2015_p8, 1, 0 }
  0x18   : > { %p1539_p9 = pneg %p2015_p8  ;;  %s316_s26 = sshll.u32 %s1902_s25, 4  ;;  %s317_s26 = int_to_ptr.vmem [resolvable:$true] %s316_s26 }
  0x19   : > { %s335_s28 = sshll.u32 %s1903_s27, 4  ;;  %s1676_s29 = scalar_lea.vmem %s301_s23, 1536  ;;  %s336_s28 = int_to_ptr.vmem [resolvable:$true] %s335_s28 }
  0x1a   : > { %p2024_p11 = pnand %p1539_p9, %p2349_p1  ;;  %p1677_p13 = scmp.ne.s32.totalorder %s301_s23, %s1676_s29 }
  0x1b   : > { %p1684_p5 = scmp.lt.s32.totalorder %s301_s23, %s301_s23  ;;  %p1685_p7 = scmp.lt.s32.totalorder %s1676_s29, %s1676_s29 }
  0x1c   : > { %p1667_p12 = pneg %p2024_p11 }
  0x1d   : > { %p1686_p9 = por %p1685_p7, %p1684_p5 }
  0x1e   : > { %p1679_p0 = pnand %p1677_p13, %p1667_p12 }
  0x20   : > { %p1680_p3 = pneg %p1679_p0 }
  0x22   : > { %p1687_p10 = pnand %p1686_p9, %p1680_p3 }
  0x24   : > { %1690 = shalt.err (!%p1687_p10)
}
  0x25   : > { %s1904_s30 = smov 64   ;;  %s1905_s11 = smov 4  }
  0x26   : > { %s2364_s1 = sld [smem:[#allocation21_spill]]  ;;  %s1702_s25 = scalar_lea.vmem %s317_s26, 3072 }
  0x27   : > { %p1703_p1 = scmp.ne.s32.totalorder %s317_s26, %s1702_s25  ;;  %p1710_p2 = scmp.lt.s32.totalorder %s317_s26, %s317_s26 }
  0x28   : > { %p1711_p6 = scmp.lt.s32.totalorder %s1702_s25, %s1702_s25 }
  0x29   : > { %p1705_p13 = pnand %p1703_p1, %p1667_p12 }
  0x2a   : > { %p1712_p5 = por %p1711_p6, %p1710_p2 }
  0x2b   : > { %p1706_p0 = pneg %p1705_p13 }
  0x2c   : > { %1542 = dma.hbm_to_vmem [thread:$0]  (!%p2024_p11), %s2364_s1, 1536, %s301_s23, [#allocation6], %s1904_s30, %s1904_s30, %s1905_s11  }
  0x2d   : > { %p1713_p3 = pnand %p1712_p5, %p1706_p0 }
  0x2f   : > { %1716 = shalt.err (!%p1713_p3)
}
  0x30   : > { %s2365_s3 = sld [smem:[#allocation22_spill]]  ;;  %s1728_s23 = scalar_lea.vmem %s336_s28, 1024 }
  0x31   : > { %p1729_p10 = scmp.ne.s32.totalorder %s336_s28, %s1728_s23  ;;  %p1736_p9 = scmp.lt.s32.totalorder %s336_s28, %s336_s28 }
  0x32   : > { %p1737_p13 = scmp.lt.s32.totalorder %s1728_s23, %s1728_s23 }
  0x33   : > { %p1731_p7 = pnand %p1729_p10, %p1667_p12 }
  0x34   : > { %p1738_p4 = por %p1737_p13, %p1736_p9 }
  0x35   : > { %p1732_p1 = pneg %p1731_p7 }
  0x36   : > { %1545 = dma.hbm_to_vmem [thread:$0]  (!%p2024_p11), %s2365_s3, 3072, %s317_s26, [#allocation6], %s1904_s30, %s1904_s30, %s1905_s11  }
  0x37   : > { %p1739_p2 = pnand %p1738_p4, %p1732_p1 }
  0x39   : > { %1742 = shalt.err (!%p1739_p2)
}
  0x3a   : > { %s2366_s6 = sld [smem:[#allocation23_spill]]  ;;  %s2055_s26 = sadd.s32 1, %s1899_s16  }
  0x3b   : > { %s36_s25 = ssub.s32 %s1899_s16, %s2055_s26  ;;  %s39_s24 = sadd.s32 1, %s1895_s15 }
  0x3c   : > { %p37_p4 = scmp.eq.s32.totalorder %s36_s25, 0  ;;  %p46_p6 = scmp.ne.s32.totalorder %s1895_s15, %s1891_s14 }
  0x3d   : > { %p47_p12 = scmp.eq.s32.totalorder %s1899_s16, 0  ;;  %p1566_p0 = scmp.lt.s32.totalorder %s1899_s16, 2 }
  0x3e   : > { %s2065_s27 = scalar_select %p37_p4, %s1895_s15, %s39_s24  }
  0x3f   : > { %p48_p5 = por %p47_p12, %p46_p6  ;;  %p2368_p3 = scmp.eq.s32.totalorder %s1994_s17, 1 }
  0x40   : > { %1548 = dma.hbm_to_vmem [thread:$0]  (!%p2024_p11), %s2366_s6, 1024, %s336_s28, [#allocation9], %s1904_s30, %s1904_s30, %s1905_s11  }
  0x41   : > { %2367 = sst [smem:[#allocation19_spill]] %s2065_s27  ;;  %p2069_p10 = por %p2368_p3, %p46_p6 }
  0x42   : > { %s352_s23 = sand.u32 1, %s1895_s15   ;;  %s1414_s12 = sshll.u32 %s1899_s16, 8 }
  0x43   : > { %s2369_s29 = scalar_select %p2069_p10, 1, 0 }
  0x44   : > { %s1334_s28 = sshll.u32 %s352_s23, 4  ;;  %s2370_s0 = sld [smem:[#allocation20_spill]] }
  0x45   : > { %s356_s25 = scalar_lea.vmem [#allocation2], %s1334_s28  ;;  %p2080_p11 = pnand %p1566_p0, %p48_p5 }
  0x46   : > { %s363_s24 = sshll.u32 %s356_s25, 4  ;;  %s2086_s1 = scalar_lea.sflag [#allocation3], %s352_s23  ;;  %s2084_s24 = int_to_ptr.vmem [resolvable:$true] %s363_s24 }
  0x47   : > { %p1745_p1 = pneg %p2080_p11 }
  0x4a   : > { %s2078_s22 = scalar_lea.hbm %s2370_s0, %s1414_s12  ;;  %s1748_s28 = scalar_lea.hbm %s2370_s0, 512 }
  0x4b   : > { %s1743_s3 = scalar_lea.hbm %s2078_s22, 256  ;;  %p1749_p2 = scmp.lt.s32.totalorder %s2078_s22, %s2370_s0 }
  0x4c   : > { %p1744_p7 = scmp.ne.s32.totalorder %s2078_s22, %s1743_s3  ;;  %p1750_p4 = scmp.lt.s32.totalorder %s1748_s28, %s1743_s3 }
  0x4e   : > { %p1746_p9 = pnand %p1745_p1, %p1744_p7  ;;  %p1751_p6 = por %p1750_p4, %p1749_p2 }
  0x50   : > { %p1747_p13 = pneg %p1746_p9 }
  0x52   : > { %p1752_p12 = pnand %p1751_p6, %p1747_p13 }
  0x54   : > { %1755 = shalt.err (!%p1752_p12)
}
  0x55   : > { %s1756_s23 = scalar_lea.vmem %s2084_s24, 256  ;;  %s1906_s6 = smov [#allocation2]  }
  0x56   : > { %p1757_p0 = scmp.ne.s32.totalorder %s2084_s24, %s1756_s23  ;;  %s1761_s27 = sshll.u32 %s1906_s6, 4  ;;  %s1762_s27 = int_to_ptr.vmem [resolvable:$false] %s1761_s27 }
  0x57   : > { %s1763_s12 = scalar_lea.vmem %s1762_s27, 512  ;;  %p1764_p7 = scmp.lt.s32.totalorder %s2084_s24, %s1762_s27 }
  0x58   : > { %p1759_p5 = pnand %p1757_p0, %p1745_p1  ;;  %p1765_p9 = scmp.lt.s32.totalorder %s1763_s12, %s1756_s23 }
  0x5a   : > { %p1760_p3 = pneg %p1759_p5  ;;  %p1766_p10 = por %p1765_p9, %p1764_p7 }
  0x5c   : > { %p1767_p8 = pnand %p1766_p10, %p1760_p3 }
  0x5e   : > { %1770 = shalt.err (!%p1767_p8)
}
  0x5f   : > { %s1907_s3 = smov 128   ;;  %s1908_s30 = smov 8  }
  0x60   : > { %1552 = dma.hbm_to_vmem [thread:$0]  (!%p2080_p11), %s2078_s22, 256, %s2084_s24, %s2086_s1, %s1907_s3, %s1907_s3, %s1908_s30  }
  0x61   : > { %p2372_p1 = scmp.ne.s32.totalorder %s2362_s21, 0 }
  0x62   : > { %s2110_s6 = sand.u32 (!%p2372_p1), 1, %s1891_s14   ;;  %p2373_p8 = scmp.ne.s32.totalorder (!%p2372_p1), %s2360_s19, 0 }
  0x63   : > { %375 = sbr.rel (%p2372_p1) target bundleno = 1082 (0x43a), region = 52  ;;  %s1338_s27 = sshll.u32 (!%p2372_p1), %s2110_s6, 4 }
  0x64   : > { %s378_s28 = scalar_lea.sflag (!%p2372_p1), [#allocation3], %s2110_s6  ;;  %s381_s11 = scalar_lea.vmem (!%p2372_p1), [#allocation2], %s1338_s27 }
  0x68   : > { %1866 = dma.done.wait (%p2373_p8), %s378_s28, 256  }
  0x69   : > { %1868 = vsyncadd (%p2373_p8), %s378_s28, 4294967040  ;;  %p2374_p10 = scmp.eq.s32.totalorder %s1994_s17, 0 }
  0x6b   : > { %1870 = dma.done.wait (%p2374_p10), [#allocation6], 4608   ;;  %p2375_p11 = pmov %p2374_p10 }
  0x6c   : > { %p2376_p13 = pmov %p2374_p10 }
  0x6d   : > { %1872 = vsyncadd (%p2375_p11), [#allocation6], 4294962688 }
  0x6e   : > { %1874 = dma.done.wait (%p2376_p13), [#allocation9], 1024   ;;  %p2377_p2 = pmov %p2374_p10 }
  0x6f   : > { %v444_v0 = vlaneseq  ;;  %v1909_v1 = vmov 0   ;;  %v451_v4 = vld [vmem:[%s381_s11] sm:$0xff]  ;;  %v452_v5 = vld [vmem:[%s381_s11 + $0x8] sm:$0xff]  ;;  %s2354_s1 = smov 64   ;;  %vm483_vm3 = vcmask 523264   ;;  %v1911_v52 = vmov 0.0  }
  0x70   : > { %1876 = vsyncadd (%p2377_p2), [#allocation9], 4294966272  ;;  %594 = vmatprep.subr.bf16.mxu0 %v1909_v1  ;;  %v454_v6 = vrot.slane %v452_v5, 7  ;;  %v465_v7 = vrot.slane %v452_v5, 1  ;;  %v1616_v8 = vpack.i.bf16 %v452_v5, %v451_v4  ;;  %v453_v9 = vrot.slane %v451_v4, 7  ;;  %v1621_v10 = vld [vmem:[#allocation5 + $0x38] sm:$0xff]  }
  0x71   : > { %v2127_v2 = vshrl.u32 %v444_v0, 7  ;;  %v464_v11 = vrot.slane %v451_v4, 1  ;;  %595 = vmatpush1.bf16.msra.mxu0 %v1621_v10  ;;  %v1622_v12 = vld [vmem:[#allocation5 + $0x30] sm:$0xff]   ;;  %v1623_v19 = vld [vmem:[#allocation5 + $0x28] sm:$0xff]   ;;  %v1624_v20 = vld [vmem:[#allocation5 + $0x20] sm:$0xff]   ;;  %vm1912_vm5 = vmmov 0  }
  0x72   : > { %1617 = vrot.lane.b32.xlu0 %v1616_v8, %s2354_s1  ;;  %596 = vmatprep.subr.bf16.mxu0 %v1909_v1  ;;  %v1625_v21 = vld [vmem:[#allocation5 + $0x18] sm:$0xff]   ;;  %v1635_v24 = vld [vmem:[#allocation7 + $0x70] sm:$0xff]   ;;  %v1637_v26 = vld [vmem:[#allocation7 + $0x68] sm:$0xff]   ;;  %s2174_s21 = sshll.u32 %s2110_s6, 3  ;;  %vm1913_vm6 = vmmov 1   ;;  %vm955_vm9 = vcmask 130048  }
  0x73   : > { %v2130_v3 = vadd.s32 8, %v2127_v2  ;;  %vm455_vm0 = vcmp.lt.s32.totalorder %v2127_v2, 1  ;;  %vm466_vm1 = vcmp.lt.s32.totalorder %v2127_v2, 7  ;;  %v1633_v22 = vld [vmem:[#allocation7 + $0x78] sm:$0xff]   ;;  %v1636_v25 = vld [vmem:[#allocation7 + $0x30] sm:$0xff]   ;;  %v1638_v28 = vld [vmem:[#allocation7 + $0x28] sm:$0xff]  }
  0x74   : > { %v2138_v13 = vsel %vm455_vm0, %v453_v9, %v454_v6  ;;  %v457_v14 = vsel %vm455_vm0, %v454_v6, %v453_v9  ;;  %v467_v15 = vsel %vm466_vm1, %v464_v11, %v465_v7  ;;  %v468_v16 = vsel %vm466_vm1, %v465_v7, %v464_v11  ;;  %v1634_v23 = vld [vmem:[#allocation7 + $0x38] sm:$0xff]   ;;  %1431 = vmatprep.subr.bf16.mxu1 %v1633_v22  ;;  %v1626_v27 = vld [vmem:[#allocation5 + $0x10] sm:$0xff]   ;;  %v1627_v29 = vld [vmem:[#allocation5 + $0x8] sm:$0xff]   ;;  %s425_s22 = scalar_lea.vmem [#allocation10], %s2174_s21  ;;  %s432_s23 = scalar_lea.vmem [#allocation11], %s2174_s21 }
  0x75   : > { %vm450_vm2 = vcmp.lt.s32.totalorder %v2130_v3, 15  ;;  %597 = vmatpush1.bf16.msra.mxu0 %v1622_v12  ;;  %1432 = vmatpush3.bf16.msra.mxu1 %v1634_v23  ;;  %v1639_v30 = vld [vmem:[#allocation7 + $0x60] sm:$0xff]   ;;  %v1641_v32 = vld [vmem:[#allocation7 + $0x58] sm:$0xff]   ;;  %v1630_v36 = vld [vmem:[#allocation5 + $0x50] sm:$0xff]   ;;  %vm447_vm4 = vcmp.gt.s32.totalorder %v2127_v2, 0  ;;  %s1136_s30 = sshll.u32 %s425_s22, 4  ;;  %s2221_s30 = int_to_ptr.vmem [resolvable:$true] %s1136_s30 }
  0x76   : > { %v474_v17 = vsel %vm450_vm2, %v468_v16, 0.0  ;;  %598 = vmatprep.subr.bf16.mxu0 %v1909_v1  ;;  %1433 = vmatprep.subr.bf16.mxu1 %v1635_v24  ;;  %v1640_v31 = vld [vmem:[#allocation7 + $0x20] sm:$0xff]   ;;  %v1642_v34 = vld [vmem:[#allocation7 + $0x18] sm:$0xff]   ;;  %v1631_v37 = vld [vmem:[#allocation5 + $0x48] sm:$0xff]   ;;  %v462_v40 = vsel %vm447_vm4, %v457_v14, 0.0  ;;  %s1152_s27 = sshll.u32 %s432_s23, 4  ;;  %s2223_s27 = int_to_ptr.vmem [resolvable:$true] %s1152_s27 }
  0x77   : > { %v487_v18 = vpack.c.bf16 %v474_v17, %v467_v15  ;;  %v1628_v33 = vld [vmem:[#allocation5] sm:$0xff]   ;;  %v1629_v35 = vld [vmem:[#allocation5 + $0x58] sm:$0xff]   ;;  %v1643_v46 = vld [vmem:[#allocation7 + $0x50] sm:$0xff]   ;;  %s1117_s28 = sand.u32 1, %s1994_s17   ;;  %s2227_s11 = sshll.u32 %s1994_s17, 7 }
  0x78   : > { %v1632_v38 = vld [vmem:[#allocation5 + $0x40] sm:$0xff]   ;;  %v1644_v47 = vld [vmem:[#allocation7 + $0x10] sm:$0xff]   ;;  %v1645_v48 = vld [vmem:[#allocation7 + $0x48] sm:$0xff]   ;;  %s2233_s24 = scalar_lea.hbm %s2347_s9, %s2227_s11  ;;  %s2235_s25 = scalar_lea.sflag [#allocation12], %s1117_s28 }
  0x79   : > { %1358 = vmatprep.mubr.msk.bf16.mxu0 %vm483_vm3, %v487_v18  ;;  %599 = vmatpush1.bf16.msra.mxu0 %v1623_v19  ;;  %v1646_v49 = vld [vmem:[#allocation7 + $0x8] sm:$0xff]   ;;  %v1647_v50 = vld [vmem:[#allocation7 + $0x40] sm:$0xff]   ;;  %vm1386_vm7 = vmpackc.low %vm1913_vm6, %vm447_vm4  ;;  %p2378_p6 = scmp.ne.s32.totalorder %s2369_s29, 0 }
  0x7a   : > { %600 = vmatprep.subr.bf16.mxu0 %v1909_v1  ;;  %1434 = vmatpush3.bf16.msra.mxu1 %v1636_v25  ;;  %v1648_v51 = vld [vmem:[#allocation7] sm:$0xff]   ;;  %v1649_v5 = vld [vmem:[#allocation7 + $0xb8] sm:$0xff]   ;;  %v1650_v7 = vld [vmem:[#allocation7 + $0xb0] sm:$0xff]  }
  0x7b   : > { %1435 = vmatprep.subr.bf16.mxu1 %v1637_v26  ;;  %v1345_v53 = vld [vmem:[%s2340_s2] ss:$0 sm:$0xff]  ;;  %v1651_v8 = vld [vmem:[#allocation7 + $0xa8] sm:$0xff]   ;;  %v1653_v10 = vld [vmem:[#allocation7 + $0x98] sm:$0xff]  }
  0x7c   : > { %v1652_v9 = vld [vmem:[#allocation7 + $0xa0] sm:$0xff]   ;;  %v1654_v11 = vld [vmem:[#allocation7 + $0x90] sm:$0xff]   ;;  %v1655_v12 = vld [vmem:[#allocation7 + $0x88] sm:$0xff]  }
  0x7d   : > { %601 = vmatpush1.bf16.msra.mxu0 %v1624_v20  ;;  %v1656_v15 = vld [vmem:[#allocation7 + $0x80] sm:$0xff]   ;;  %vm1389_vm8 = vmpackc.low %vm450_vm2, %vm1913_vm6  ;;  %v1657_v19 = vld [vmem:[#allocation8 + $0x38] sm:$0xff]  }
  0x7e   : > { %602 = vmatprep.subr.bf16.mxu0 %v1909_v1  ;;  %1436 = vmatpush3.bf16.msra.mxu1 %v1638_v28  ;;  %v1658_v20 = vld [vmem:[#allocation8 + $0x30] sm:$0xff]   ;;  %v1659_v2 = vld [vmem:[#allocation8 + $0x28] sm:$0xff]   ;;  %v1660_v3 = vld [vmem:[#allocation8 + $0x20] sm:$0xff]  }
  0x7f   : > { %1437 = vmatprep.subr.bf16.mxu1 %v1639_v30  ;;  %v1662_v22 = vld [vmem:[#allocation8 + $0x10] sm:$0xff]   ;;  %v1663_v23 = vld [vmem:[#allocation8 + $0x8] sm:$0xff]  }
  0x81   : > { %603 = vmatpush1.bf16.msra.mxu0 %v1625_v21  ;;  %v1661_v21 = vld [vmem:[#allocation8 + $0x18] sm:$0xff]  }
  0x82   : > { %604 = vmatprep.subr.bf16.mxu0 %v1909_v1  ;;  %1438 = vmatpush3.bf16.msra.mxu1 %v1640_v31 }
  0x83   : > { %1439 = vmatprep.subr.bf16.mxu1 %v1641_v32 }
  0x85   : > { %605 = vmatpush1.bf16.msra.mxu0 %v1626_v27 }
  0x86   : > { %606 = vmatprep.subr.bf16.mxu0 %v1909_v1  ;;  %1440 = vmatpush3.bf16.msra.mxu1 %v1642_v34 }
  0x87   : > { %1441 = vmatprep.subr.bf16.mxu1 %v1643_v46 }
  0x89   : > { %607 = vmatpush1.bf16.msra.mxu0 %v1627_v29  ;;  %v1361_v29 = vld [vmem:[%s2342_s4] ss:$0 sm:$0xff] }
  0x8a   : > { %608 = vmatprep.subr.bf16.mxu0 %v1909_v1  ;;  %1442 = vmatpush3.bf16.msra.mxu1 %v1644_v47 }
  0x8b   : > { %1443 = vmatprep.subr.bf16.mxu1 %v1645_v48 }
  0x8d   : > { %609 = vmatpush1.bf16.msra.mxu0 %v1628_v33 }
  0x8e   : > { %618 = vmatprep.subr.bf16.mxu0 %v1909_v1  ;;  %1444 = vmatpush3.bf16.msra.mxu1 %v1646_v49 }
  0x8f   : > { %1445 = vmatprep.subr.bf16.mxu1 %v1647_v50 }
  0x91   : > { %619 = vmatpush2.bf16.msra.mxu0 %v1629_v35 }
  0x92   : > { %620 = vmatprep.subr.bf16.mxu0 %v1909_v1  ;;  %1446 = vmatpush3.bf16.msra.mxu1 %v1648_v51 }
  0x93   : > { %1473 = vmatprep.subr.bf16.mxu1 %v1911_v52 }
  0x95   : > { %621 = vmatpush2.bf16.msra.mxu0 %v1630_v36 }
  0x96   : > { %622 = vmatprep.subr.bf16.mxu0 %v1909_v1 }
  0x99   : > { %623 = vmatpush2.bf16.msra.mxu0 %v1631_v37 }
  0x9a   : > { %624 = vmatprep.subr.bf16.mxu0 %v1909_v1 }
  0x9d   : > { %625 = vmatpush2.bf16.msra.mxu0 %v1632_v38 }
  0x9e   : > { %1499 = vmatprep.subr.bf16.mxu0 %v1911_v52 }
  0xe4   : > { %v1618_v39 = vpop.permute.xlu0 %1617 }
  0xe5   : > { %v1620_v41 = vunpack.i.h.bf16 %v1618_v39  ;;  %v1619_v42 = vunpack.i.l.bf16 %v1618_v39 }
  0xe7   : > { %v484_v43 = vsel %vm483_vm3, %v462_v40, %v1619_v42  ;;  %v485_v44 = vsel %vm483_vm3, %v2138_v13, %v1620_v41  ;;  %v954_v42 = vld [vmem:[%s2343_s5] sm:$0xf] }
  0xe8   : > { %v486_v45 = vpack.c.bf16 %v485_v44, %v484_v43  ;;  %v1664_v43 = vld [vmem:[#allocation8] sm:$0xff]  }
  0xea   : > { %627 = vmatmul.mubr.bf16.vlgmr.msra.gmra.mxu0 %v486_v45 }
  0xeb   : > { %1515 = vmatprep.mubr.msk.bf16.mxu0 %vm1912_vm5, %v1911_v52  ;;  %1500 = vmatpush3.bf16.msra.mxu0 %v1657_v19 }
  0xec   : > { %1501 = vmatprep.subr.bf16.mxu0 %v1911_v52 }
  0xef   : > { %1502 = vmatpush3.bf16.msra.mxu0 %v1658_v20 }
  0xf0   : > { %1503 = vmatprep.subr.bf16.mxu0 %v1911_v52 }
  0xf3   : > { %1504 = vmatpush3.bf16.msra.mxu0 %v1659_v2 }
  0xf4   : > { %1505 = vmatprep.subr.bf16.mxu0 %v1911_v52 }
  0xf7   : > { %1506 = vmatpush3.bf16.msra.mxu0 %v1660_v3 }
  0xf8   : > { %1507 = vmatprep.subr.bf16.mxu0 %v1911_v52 }
  0xfb   : > { %1508 = vmatpush3.bf16.msra.mxu0 %v1661_v21 }
  0xfc   : > { %1509 = vmatprep.subr.bf16.mxu0 %v1911_v52 }
  0xff   : > { %1510 = vmatpush3.bf16.msra.mxu0 %v1662_v22 }
 0x100   : > { %1511 = vmatprep.subr.bf16.mxu0 %v1911_v52 }
 0x103   : > { %1512 = vmatpush3.bf16.msra.mxu0 %v1663_v23 }
 0x104   : > { %1513 = vmatprep.subr.bf16.mxu0 %v1911_v52 }
 0x107   : > { %1514 = vmatpush3.bf16.msra.mxu0 %v1664_v43 }
 0x1aa   : > { %v628_v54 = vpop.f32.mrf.mxu0 }
 0x1ab   : > { %v629_v55 = vadd.f32 %v1345_v53, %v628_v54 }
 0x1ac   : > { %v630_v56 = vpop.f32.mrf.mxu0 }
 0x1ad   : > { %v635_v58 = vmax.f32 %v629_v55, 0.0 }
 0x1ae   : > { %v631_v57 = vpop.f32.mrf.mxu0 }
 0x1af   : > { %v632_v59 = vadd.f32 %v1345_v53, %v631_v57  ;;  %v647_v62 = vrot.slane %v635_v58, 7  ;;  %v653_v14 = vrot.slane %v635_v58, 1 }
 0x1b0   : > { %v633_v60 = vpop.f32.mrf.mxu0 }
 0x1b1   : > { %v636_v61 = vmax.f32 %v632_v59, 0.0 }
 0x1b3   : > { %v648_v63 = vrot.slane %v636_v61, 7  ;;  %v637_v0 = vpack.c.bf16 %v636_v61, %v635_v58  ;;  %v654_v13 = vrot.slane %v636_v61, 1 }
 0x1b5   : > { %1425 = vst [vmem:[%s425_s22] sm:$0xff] %v637_v0   ;;  %892 = vmatprep.mubr.bf16.mxu1 %v637_v0  ;;  %v649_v1 = vsel %vm455_vm0, %v647_v62, %v648_v63  ;;  %v650_v4 = vsel %vm455_vm0, %v648_v63, %v647_v62  ;;  %v655_v16 = vsel %vm466_vm1, %v653_v14, %v654_v13  ;;  %s1771_s22 = scalar_lea.vmem %s2223_s27, 128 }
 0x1b6   : > { %v1387_v6 = vpack.c.bf16 %v649_v1, %v650_v4  ;;  %v656_v17 = vsel %vm466_vm1, %v654_v13, %v653_v14  ;;  %p1772_p4 = scmp.ne.s32.totalorder %s2223_s27, %s1771_s22 }
 0x1b7   : > { %v1390_v18 = vpack.c.bf16 %v656_v17, %v655_v16 }
 0x1b8   : > { %1388 = vmatmul.mubr.msk.bf16.vlgmr.msra.gmra.mxu1 %vm1386_vm7, %v1387_v6  ;;  %p1773_p12 = pnand %p1772_p4, %p2378_p6 }
 0x1b9   : > { %1474 = vmatpush3.bf16.msra.mxu1 %v1649_v5  ;;  %1489 = vmatprep.mubr.msk.bf16.mxu1 %vm1912_vm5, %v1911_v52 }
 0x1ba   : > { %1475 = vmatprep.subr.bf16.mxu1 %v1911_v52  ;;  %p1774_p0 = pneg %p1773_p12 }
 0x1bd   : > { %1476 = vmatpush3.bf16.msra.mxu1 %v1650_v7 }
 0x1be   : > { %1477 = vmatprep.subr.bf16.mxu1 %v1911_v52 }
 0x1c1   : > { %1478 = vmatpush3.bf16.msra.mxu1 %v1651_v8 }
 0x1c2   : > { %1479 = vmatprep.subr.bf16.mxu1 %v1911_v52 }
 0x1c5   : > { %1480 = vmatpush3.bf16.msra.mxu1 %v1652_v9 }
 0x1c6   : > { %1481 = vmatprep.subr.bf16.mxu1 %v1911_v52 }
 0x1c9   : > { %1482 = vmatpush3.bf16.msra.mxu1 %v1653_v10 }
 0x1ca   : > { %1483 = vmatprep.subr.bf16.mxu1 %v1911_v52 }
 0x1cd   : > { %1484 = vmatpush3.bf16.msra.mxu1 %v1654_v11 }
 0x1ce   : > { %1485 = vmatprep.subr.bf16.mxu1 %v1911_v52 }
 0x1d1   : > { %1486 = vmatpush3.bf16.msra.mxu1 %v1655_v12 }
 0x1d2   : > { %1487 = vmatprep.subr.bf16.mxu1 %v1911_v52 }
 0x1d5   : > { %1488 = vmatpush3.bf16.msra.mxu1 %v1656_v15 }
 0x1d6   : > { %1493 = vmatprep.subr.bf16.mxu1 %v1911_v52 }
 0x1d8   : > { %1490 = vmatmul.mubr.msk.bf16.vlgmr.msra.gmra.mxu1 %vm1389_vm8, %v1390_v18 }
 0x1d9   : > { %1495 = vmatprep.mubr.msk.bf16.mxu1 %vm1912_vm5, %v1911_v52 }
 0x278   : > { %v1447_v24 = vpop.f32.mrf.mxu1 }
 0x27a   : > { %v1448_v25 = vpop.f32.mrf.mxu1 }
 0x27b   : > { %v1449_v28 = vadd.f32 %v1448_v25, %v1447_v24 }
 0x27c   : > { %v1450_v26 = vpop.f32.mrf.mxu1 }
 0x27d   : > { %v895_v32 = vadd.f32 %v1449_v28, %v1361_v29 }
 0x27e   : > { %v1451_v27 = vpop.f32.mrf.mxu1 }
 0x27f   : > { %v1452_v30 = vadd.f32 %v1451_v27, %v1450_v26 }
 0x281   : > { %v898_v35 = vadd.f32 %v1452_v30, %v1361_v29 }
 0x298   : > { %v935_v31 = vpop.f32.mrf.mxu1 }
 0x299   : > { %v936_v34 = vadd.f32 %v935_v31, %v895_v32 }
 0x29a   : > { %v1491_v33 = vpop.f32.mrf.mxu1 }
 0x29b   : > { %v942_v39 = vmax.f32 %v936_v34, 0.0 }
 0x29c   : > { %v938_v36 = vpop.f32.mrf.mxu1 }
 0x29d   : > { %v939_v37 = vadd.f32 %v938_v36, %v898_v35 }
 0x29e   : > { %v1492_v38 = vpop.f32.mrf.mxu1 }
 0x29f   : > { %v943_v40 = vmax.f32 %v939_v37, 0.0 }
 0x2a1   : > { %v944_v41 = vpack.c.bf16 %v943_v40, %v942_v39 }
 0x2a3   : > { %1430 = vst [vmem:[%s432_s23] sm:$0xff] %v944_v41   ;;  %1494 = vmatpush3.bf16.msra.mxu1 %v944_v41  ;;  %s1914_s23 = smov [#allocation11]  }
 0x2a4   : > { %s1775_s12 = sshll.u32 %s1914_s23, 4  ;;  %s1776_s12 = int_to_ptr.vmem [resolvable:$false] %s1775_s12 }
 0x2a5   : > { %s1777_s3 = scalar_lea.vmem %s1776_s12, 256  ;;  %p1778_p5 = scmp.lt.s32.totalorder %s2223_s27, %s1776_s12 }
 0x2a6   : > { %1496 = vmatmul.mubr.msk.bf16.vlgmr.msra.gmra.mxu1 %vm955_vm9, %v954_v42  ;;  %p1779_p3 = scmp.lt.s32.totalorder %s1777_s3, %s1771_s22 }
 0x2a8   : > { %p1780_p7 = por %p1779_p3, %p1778_p5 }
 0x2aa   : > { %p1781_p9 = pnand %p1780_p7, %p1774_p0 }
 0x366   : > { %v993_v44 = vpop.f32.mrf.mxu1 }
 0x367   : > { %v999_v45 = vpack.c.bf16 %v993_v44, %v993_v44 }
 0x368   : > { %v1497_v46 = vpop.f32.mrf.mxu1 }
 0x369   : > { %1516 = vmatmul.mubr.bf16.vlgmr.msra.gmra.mxu0 %v999_v45 }
 0x36a   : > { %v996_v47 = vpop.f32.mrf.mxu1 }
 0x36c   : > { %v1498_v48 = vpop.f32.mrf.mxu1 }
 0x36d   : > { %1784 = shalt.err (!%p1781_p9)
}
 0x36e   : > { %s1785_s17 = scalar_lea.hbm %s2233_s24, 128  ;;  %s1789_s19 = scalar_lea.hbm %s2347_s9, 256 }
 0x36f   : > { %p1786_p1 = scmp.ne.s32.totalorder %s2233_s24, %s1785_s17  ;;  %p1790_p11 = scmp.lt.s32.totalorder %s2233_s24, %s2347_s9 }
 0x370   : > { %p1791_p13 = scmp.lt.s32.totalorder %s1789_s19, %s1785_s17 }
 0x371   : > { %p1787_p8 = pnand %p1786_p1, %p2378_p6 }
 0x372   : > { %p1792_p2 = por %p1791_p13, %p1790_p11 }
 0x373   : > { %p1788_p10 = pneg %p1787_p8 }
 0x375   : > { %p1793_p4 = pnand %p1792_p2, %p1788_p10 }
 0x377   : > { %1796 = shalt.err (!%p1793_p4)
}
 0x378   : > { %s1915_s22 = smov 4   ;;  %s2379_s12 = smov 64  }
 0x379   : > { %1534 = dma.vmem_to_hbm [thread:$0]  (%p2378_p6), %s2223_s27, 128, %s2233_s24, %s2235_s25, %s2379_s12, %s2379_s12, %s1915_s22  }
 0x37a   : > { %s2265_s17 = scalar_lea.hbm %s2346_s8, %s2227_s11  ;;  %s1113_s28 = scalar_lea.sflag [#allocation4], %s2110_s6 }
 0x37b   : > { %s1797_s18 = scalar_lea.vmem %s2221_s30, 128  ;;  %s1916_s19 = smov [#allocation10]  }
 0x37c   : > { %p1798_p12 = scmp.ne.s32.totalorder %s2221_s30, %s1797_s18  ;;  %s1801_s23 = sshll.u32 %s1916_s19, 4  ;;  %s1802_s23 = int_to_ptr.vmem [resolvable:$false] %s1801_s23 }
 0x37d   : > { %s1803_s0 = scalar_lea.vmem %s1802_s23, 256  ;;  %p1804_p3 = scmp.lt.s32.totalorder %s2221_s30, %s1802_s23 }
 0x37e   : > { %p1799_p0 = pnand %p1798_p12, %p2378_p6  ;;  %p1805_p7 = scmp.lt.s32.totalorder %s1803_s0, %s1797_s18 }
 0x380   : > { %p1800_p5 = pneg %p1799_p0  ;;  %p1806_p9 = por %p1805_p7, %p1804_p3 }
 0x382   : > { %p1807_p1 = pnand %p1806_p9, %p1800_p5 }
 0x384   : > { %1810 = shalt.err (!%p1807_p1)
}
 0x385   : > { %s1811_s27 = scalar_lea.hbm %s2265_s17, 128  ;;  %s1815_s1 = scalar_lea.hbm %s2346_s8, 256 }
 0x386   : > { %p1812_p8 = scmp.ne.s32.totalorder %s2265_s17, %s1811_s27  ;;  %p1816_p13 = scmp.lt.s32.totalorder %s2265_s17, %s2346_s8 }
 0x387   : > { %p1817_p2 = scmp.lt.s32.totalorder %s1815_s1, %s1811_s27 }
 0x388   : > { %p1813_p10 = pnand %p1812_p8, %p2378_p6 }
 0x389   : > { %p1818_p4 = por %p1817_p2, %p1816_p13 }
 0x38a   : > { %p1814_p11 = pneg %p1813_p10 }
 0x38c   : > { %p1819_p12 = pnand %p1818_p4, %p1814_p11 }
 0x38e   : > { %1822 = shalt.err (!%p1819_p12)
}
 0x38f   : > { %1533 = dma.vmem_to_hbm [thread:$0]  (%p2378_p6), %s2221_s30, 128, %s2265_s17, %s1113_s28, %s2379_s12, %s2379_s12, %s1915_s22  }
 0x390   : > { %v1395_v49 = vld [vmem:[%s2345_s7] ss:$0 sm:$0xff]  ;;  %s439_s23 = scalar_lea.vmem [#allocation13], %s2174_s21  ;;  %s2299_s1 = scalar_lea.hbm %s2348_s10, %s2227_s11 }
 0x391   : > { %s1168_s27 = sshll.u32 %s439_s23, 4  ;;  %s1917_s30 = smov [#allocation13]   ;;  %s1169_s27 = int_to_ptr.vmem [resolvable:$true] %s1168_s27 }
 0x392   : > { %s1823_s3 = scalar_lea.vmem %s1169_s27, 128  ;;  %s1827_s22 = sshll.u32 %s1917_s30, 4  ;;  %s1828_s22 = int_to_ptr.vmem [resolvable:$false] %s1827_s22 }
 0x393   : > { %p1824_p0 = scmp.ne.s32.totalorder %s1169_s27, %s1823_s3  ;;  %s1829_s21 = scalar_lea.vmem %s1828_s22, 256 }
 0x394   : > { %p1830_p7 = scmp.lt.s32.totalorder %s1169_s27, %s1828_s22  ;;  %p1831_p9 = scmp.lt.s32.totalorder %s1829_s21, %s1823_s3 }
 0x395   : > { %p1825_p5 = pnand %p1824_p0, %p2378_p6 }
 0x396   : > { %p1832_p1 = por %p1831_p9, %p1830_p7 }
 0x397   : > { %p1826_p3 = pneg %p1825_p5 }
 0x399   : > { %p1833_p8 = pnand %p1832_p1, %p1826_p3 }
 0x429   : > { %v1105_v50 = vpop.f32.mrf.mxu0 }
 0x42a   : > { %v1106_v51 = vadd.f32 %v1395_v49, %v1105_v50 }
 0x42b   : > { %v1517_v52 = vpop.f32.mrf.mxu0 }
 0x42c   : > { %1111 = vst [vmem:[%s439_s23] sm:$0xff] %v1106_v51 }
 0x42d   : > { %v1108_v53 = vpop.f32.mrf.mxu0 }
 0x42e   : > { %1836 = shalt.err (!%p1833_p8)
}
 0x42f   : > { %s1837_s11 = scalar_lea.hbm %s2299_s1, 128  ;;  %s1841_s28 = scalar_lea.hbm %s2348_s10, 256 }
 0x430   : > { %p1838_p10 = scmp.ne.s32.totalorder %s2299_s1, %s1837_s11  ;;  %p1842_p2 = scmp.lt.s32.totalorder %s2299_s1, %s2348_s10 }
 0x431   : > { %p1843_p4 = scmp.lt.s32.totalorder %s1841_s28, %s1837_s11 }
 0x432   : > { %p1839_p11 = pnand %p1838_p10, %p2378_p6 }
 0x433   : > { %p1844_p12 = por %p1843_p4, %p1842_p2 }
 0x434   : > { %p1840_p13 = pneg %p1839_p11 }
 0x436   : > { %p1845_p0 = pnand %p1844_p12, %p1840_p13 }
 0x438   : > { %1848 = shalt.err (!%p1845_p0)
}
 0x439   : > { %1535 = dma.vmem_to_hbm [thread:$0]  (%p2378_p6), %s1169_s27, 128, %s2299_s1, %s2235_s25   ;;  %v1518_v54 = vpop.f32.mrf.mxu0 }
 0x43a PF: > { %s1180_s18 = sand.u32 1, %s1887_s13   ;;  %p2380_p5 = scmp.ne.s32.totalorder %s2361_s20, 0 }
 0x43b   : > { %p2381_p3 = scmp.ge.s32.totalorder %s1899_s16, 2  ;;  %s1181_s23 = scalar_lea.sflag [#allocation4], %s1180_s18 }
 0x43d   : > { %p1554_p7 = pnand %p2381_p3, %p2380_p5 }
 0x43f   : > { %p1555_p9 = pneg %p1554_p7 }
 0x441   : > { %1878 = dma.done.wait (%p1555_p9), %s1181_s23, 128  }
 0x442   : > { %1880 = vsyncadd (%p1555_p9), %s1181_s23, 4294967168  ;;  %s2382_s6 = sadd.s32 4294967294, %s1899_s16  }
 0x443   : > { %s1189_s24 = sand.u32 1, %s2382_s6  }
 0x444   : > { %s1190_s29 = scalar_lea.sflag [#allocation12], %s1189_s24 }
 0x445   : > { %1882 = dma.done.wait (%p1555_p9), %s1190_s29, 256  }
 0x446   : > { %1884 = vsyncadd (%p1555_p9), %s1190_s29, 4294967040  ;;  %s2383_s25 = sld [smem:[#allocation19_spill]]  ;;  %p29_p6 = scmp.ge.s32.totalorder %s2055_s26, 4  }
 0x447   : > { %s2384_s13 = smov %s1891_s14  ;;  %s2385_s14 = smov %s1895_s15 }
 0x448   : > { %s2387_s16 = smov %s2055_s26  ;;  %31 = sbr.rel (!%p29_p6) target bundleno = 14 (0xe), region = 141 }
 0x44c   : > { %s2386_s15 = smov %s2383_s25 }
 0x44d   :  { %1204 = vsyncpa [#allocation3], 1 }
 0x44e   :  { %1206 = vsyncpa [#allocation3 + $0x1], 1 }
 0x44f   :  { %1207 = vsyncpa [#allocation6], 1 }
 0x450   :  { %1208 = vsyncpa [#allocation9], 1 }
 0x451   :  { %1209 = vsyncpa [#allocation4], 1 }
 0x452   :  { %1211 = vsyncpa [#allocation4 + $0x1], 1 }
 0x453   :  { %1212 = vsyncpa [#allocation12], 1 }
 0x454   :  { %1214 = vsyncpa [#allocation12 + $0x1], 1 }

</bundles_post_ra>
